<compile_context>
chip_gen: v7x
topology: tpu7x:2x2x1
jax: 0.10.0
libtpu: 0.0.40
codegen_flags: <defaults>
</compile_context>

<pallas_src>
import functools
import math

import jax
import jax.numpy as jnp
from jax.experimental import pallas as pl
from jax.experimental.pallas import tpu as pltpu

D_IN = 4
D_KQ = 8
D_V = 8
LANE_PAD = 128  # per-projection lane padding so every tensor is lane-dense


def fuse_qkv_weights(w_query, w_key, w_value, lane_pad=LANE_PAD):
    """One-time weight preprocessing (hoisted out of the hot path).

    Returns (d_in, 3*lane_pad) = [Wq | 0 | Wk | 0 | Wv | 0] so that the fused
    projection output and the q/k/v slices are 128-lane aligned and 128 wide.
    """
    assert lane_pad % 128 == 0
    assert lane_pad >= max(w_query.shape[1], w_key.shape[1], w_value.shape[1])

    def pad(w):
        return jnp.pad(w, ((0, 0), (0, lane_pad - w.shape[1])))

    return jnp.concatenate([pad(w_query), pad(w_key), pad(w_value)], axis=1)


def _causal_attention_kernel(x_ref, w_ref, o_ref, *, d_kq, lane_pad,
                             matmul_dtype):
    # x_ref: (1, T, d_in)          one batch element (grid axis 0 = batch)
    # w_ref: (d_in, 3*lane_pad)    fused, lane-padded [W_query | W_key | W_value]
    # o_ref: (1, T, lane_pad)      lane-dense output slab (real data in [:d_v])
    P = lane_pad
    x = x_ref[...]                                   # f32
    w = w_ref[...]                                   # f32

    # Fused QKV projection: one MXU contraction, N = 3*128 (lane-dense).
    qkv = jnp.einsum("bti,io->bto",
                     x.astype(matmul_dtype), w.astype(matmul_dtype),
                     preferred_element_type=jnp.float32)   # (1, T, 3P) f32

    # Fold the softmax scale into q (zeros in the padded lanes stay zero).
    inv_sqrt_dkq = 1.0 / math.sqrt(d_kq)
    q = qkv[:, :, 0:P] * inv_sqrt_dkq                # (1, T, P) f32
    k = qkv[:, :, P:2 * P]                           # (1, T, P) f32
    v = qkv[:, :, 2 * P:3 * P]                       # (1, T, P) f32

    # attn_scores = q @ k^T (already scaled); padded lanes contribute 0.
    scores = jnp.einsum("btd,bsd->bts",
                        q.astype(matmul_dtype), k.astype(matmul_dtype),
                        preferred_element_type=jnp.float32)   # (1, T, T) f32

    # Causal mask: columns s > t get -inf (triu, diagonal=1).
    T = scores.shape[1]
    row = jax.lax.broadcasted_iota(jnp.int32, (T, T), 0)
    col = jax.lax.broadcasted_iota(jnp.int32, (T, T), 1)
    masked = jnp.where((col > row)[None, :, :], -jnp.inf, scores)

    # softmax(masked, axis=-1) in f32 (diagonal always unmasked -> no NaN row).
    m = jnp.max(masked, axis=-1, keepdims=True)
    e = jnp.exp(masked - m)
    denom = jnp.sum(e, axis=-1, keepdims=True)
    attn = e * pl.reciprocal(denom, approx=True)     # EUP vrcp slot, ~free

    # context = attn @ v -> (1, T, P); padded lanes are exactly zero.
    ctx = jnp.einsum("bts,bsd->btd",
                     attn.astype(matmul_dtype), v.astype(matmul_dtype),
                     preferred_element_type=jnp.float32)
    o_ref[...] = ctx.astype(o_ref.dtype)             # full-width unmasked store


def causal_attention(x, w_fused, *, d_kq, d_v, lane_pad=LANE_PAD,
                     matmul_dtype=jnp.bfloat16):
    """x: (B, T, d_in) f32; w_fused from fuse_qkv_weights. Returns (B, T, d_v)."""
    B, T, d_in = x.shape
    assert w_fused.shape == (d_in, 3 * lane_pad), w_fused.shape

    kernel = functools.partial(_causal_attention_kernel, d_kq=d_kq,
                               lane_pad=lane_pad, matmul_dtype=matmul_dtype)

    out_padded = pl.pallas_call(
        kernel,
        out_shape=jax.ShapeDtypeStruct((B, T, lane_pad), jnp.float32),
        grid_spec=pltpu.PrefetchScalarGridSpec(
            num_scalar_prefetch=0,
            grid=(B,),  # batch axis -> sharded across the 2 TCs on v7x
            in_specs=[
                pl.BlockSpec((1, T, d_in), lambda b: (b, 0, 0)),
                pl.BlockSpec((d_in, 3 * lane_pad), lambda b: (0, 0)),
            ],
            out_specs=pl.BlockSpec((1, T, lane_pad), lambda b: (b, 0, 0)),
        ),
        compiler_params=pltpu.CompilerParams(
            dimension_semantics=("parallel",)),
    )(x, w_fused)

    # Padded lanes are exact zeros; slice back to the module's (B, T, d_v).
    # (With packed multi-head output this slice disappears entirely.)
    return out_padded[..., :d_v]


def _reference(x, w_query, w_key, w_value):
    """Pure-JAX reference mirroring the PyTorch forward exactly (f32)."""
    keys = jnp.matmul(x, w_key)
    queries = jnp.matmul(x, w_query)
    values = jnp.matmul(x, w_value)
    scores = jnp.matmul(queries, jnp.swapaxes(keys, 2, 1))
    T = scores.shape[1]
    mask = jnp.triu(jnp.ones((T, T), dtype=bool), k=1)
    masked = jnp.where(mask[None, :, :], -jnp.inf, scores)
    attn = jax.nn.softmax(masked / math.sqrt(D_KQ), axis=-1)
    return jnp.matmul(attn, values)


if __name__ == "__main__":
    key = jax.random.PRNGKey(0)
    k_x, k_q, k_k, k_v = jax.random.split(key, 4)

    B, T = 2, 8
    # torch.rand -> uniform [0, 1)
    x = jax.random.uniform(k_x, (B, T, D_IN), dtype=jnp.float32)
    w_query = jax.random.uniform(k_q, (D_IN, D_KQ), dtype=jnp.float32)
    w_key = jax.random.uniform(k_k, (D_IN, D_KQ), dtype=jnp.float32)
    w_value = jax.random.uniform(k_v, (D_IN, D_V), dtype=jnp.float32)

    # One-time weight fusion + lane padding (hoisted out of the hot path).
    w_fused = fuse_qkv_weights(w_query, w_key, w_value)

    ref = _reference(x, w_query, w_key, w_value)

    # Exact f32 MXU path: tight parity with the PyTorch module
    # (only the approximate EUP reciprocal differs, ~1e-4 relative).
    out_f32 = jax.block_until_ready(
        causal_attention(x, w_fused, d_kq=D_KQ, d_v=D_V,
                         matmul_dtype=jnp.float32))
    assert out_f32.shape == (B, T, D_V), out_f32.shape
    assert jnp.allclose(out_f32, ref, atol=5e-3, rtol=5e-3), (
        float(jnp.max(jnp.abs(out_f32 - ref))))

    # Default bf16-MXU path (native MXU input format on v5e/v6e/v7x):
    # softmax stays f32, accumulation is f32, but the pre-softmax score
    # quantization from bf16 q/k means ~1e-2-scale deviations vs the f32
    # reference, hence the looser tolerance here.
    out_bf16 = jax.block_until_ready(
        causal_attention(x, w_fused, d_kq=D_KQ, d_v=D_V))
    assert out_bf16.shape == (B, T, D_V), out_bf16.shape
    assert jnp.allclose(out_bf16, ref, atol=1e-1, rtol=1e-1), (
        float(jnp.max(jnp.abs(out_bf16 - ref))))

    print("KERNEL_OK")
</pallas_src>

<mosaic_0001>
module attributes {stable_mosaic.version = 11 : i64} {
  func.func @_causal_attention_kernel(%arg0: i32, %arg1: memref<1x8x4xf32, #tpu.memory_space<vmem>>, %arg2: memref<4x384xf32, #tpu.memory_space<vmem>>, %arg3: memref<1x8x128xf32, #tpu.memory_space<vmem>>) attributes {dimension_semantics = [#tpu.dimension_semantics<parallel>], iteration_bounds = array<i64: 2>, scalar_prefetch = 0 : i64, scratch_operands = 0 : i64, tpu.core_type = #tpu.core_type<tc>, window_params = [{transform_indices = @transform_0, window_bounds = array<i64: 1, 8, 4>}, {pipeline_mode = #tpu.pipeline_mode<synchronous>, transform_indices = @transform_1, window_bounds = array<i64: 4, 384>}, {transform_indices = @transform_2, window_bounds = array<i64: 1, 8, 128>}]} {
    %c0 = arith.constant 0 : index
    %c0_0 = arith.constant 0 : index
    %c0_1 = arith.constant 0 : index
    %0 = vector.load %arg1[%c0, %c0_0, %c0_1] : memref<1x8x4xf32, #tpu.memory_space<vmem>>, vector<1x8x4xf32>
    %c0_2 = arith.constant 0 : index
    %c0_3 = arith.constant 0 : index
    %1 = vector.load %arg2[%c0_2, %c0_3] : memref<4x384xf32, #tpu.memory_space<vmem>>, vector<4x384xf32>
    "tpu.trace_start"() <{level = 10 : i32, message = "bti,io->bto"}> : () -> ()
    %cst = arith.constant dense<0.000000e+00> : vector<1x8x384xf32>
    %2 = tpu.matmul %0, %1, %cst {dimension_numbers = #tpu.dot_dimension_numbers<[2], [0], [0, 1], [1], [0, 0, 0, 1, 1, 1], [], []>} : vector<1x8x4xf32>, vector<4x384xf32>, vector<1x8x384xf32> -> vector<1x8x384xf32>
    "tpu.trace_stop"() : () -> ()
    %3 = vector.extract_strided_slice %2 {offsets = [0, 0, 0], sizes = [1, 8, 128], strides = [1, 1, 1]} : vector<1x8x384xf32> to vector<1x8x128xf32>
    %cst_4 = arith.constant 0.353553385 : f32
    %4 = vector.broadcast %cst_4 : f32 to vector<1x8x128xf32>
    %5 = arith.mulf %3, %4 : vector<1x8x128xf32>
    %6 = vector.extract_strided_slice %2 {offsets = [0, 0, 128], sizes = [1, 8, 128], strides = [1, 1, 1]} : vector<1x8x384xf32> to vector<1x8x128xf32>
    %7 = vector.extract_strided_slice %2 {offsets = [0, 0, 256], sizes = [1, 8, 128], strides = [1, 1, 1]} : vector<1x8x384xf32> to vector<1x8x128xf32>
    "tpu.trace_start"() <{level = 10 : i32, message = "btd,bsd->bts"}> : () -> ()
    %cst_5 = arith.constant dense<0.000000e+00> : vector<1x8x8xf32>
    %8 = tpu.matmul %5, %6, %cst_5 {dimension_numbers = #tpu.dot_dimension_numbers<[2], [2], [1], [1], [0, 0, 0, 1, 1, 1], [0], [0]>} : vector<1x8x128xf32>, vector<1x8x128xf32>, vector<1x8x8xf32> -> vector<1x8x8xf32>
    "tpu.trace_stop"() : () -> ()
    %9 = tpu.iota {dimensions = array<i32: 0>} : vector<8x8xi32>
    %10 = tpu.iota {dimensions = array<i32: 1>} : vector<8x8xi32>
    %11 = arith.cmpi sgt, %10, %9 : vector<8x8xi32>
    %12 = vector.shape_cast %11 : vector<8x8xi1> to vector<1x8x8xi1>
    %cst_6 = arith.constant 0xFF800000 : f32
    %13 = vector.broadcast %cst_6 : f32 to vector<1x8x8xf32>
    %14 = arith.select %12, %13, %8 : vector<1x8x8xi1>, vector<1x8x8xf32>
    %cst_7 = arith.constant dense<0xFF800000> : vector<1x8xf32>
    %15 = vector.multi_reduction <maximumf>, %14, %cst_7 [2] : vector<1x8x8xf32> to vector<1x8xf32>
    %16 = vector.shape_cast %15 : vector<1x8xf32> to vector<1x8x1xf32>
    %17 = vector.broadcast %16 : vector<1x8x1xf32> to vector<1x8x8xf32>
    %18 = arith.subf %14, %17 : vector<1x8x8xf32>
    %19 = math.exp %18 : vector<1x8x8xf32>
    %cst_8 = arith.constant dense<0.000000e+00> : vector<1x8xf32>
    %20 = vector.multi_reduction <add>, %19, %cst_8 [2] : vector<1x8x8xf32> to vector<1x8xf32>
    %21 = vector.shape_cast %20 : vector<1x8xf32> to vector<1x8x1xf32>
    %22 = tpu.reciprocal %21 {approx = true} : vector<1x8x1xf32> -> vector<1x8x1xf32>
    %23 = vector.broadcast %22 : vector<1x8x1xf32> to vector<1x8x8xf32>
    %24 = arith.mulf %19, %23 : vector<1x8x8xf32>
    "tpu.trace_start"() <{level = 10 : i32, message = "bts,bsd->btd"}> : () -> ()
    %cst_9 = arith.constant dense<0.000000e+00> : vector<1x8x128xf32>
    %25 = tpu.matmul %24, %7, %cst_9 {dimension_numbers = #tpu.dot_dimension_numbers<[2], [1], [1], [2], [0, 0, 0, 1, 1, 2], [0], [0]>} : vector<1x8x8xf32>, vector<1x8x128xf32>, vector<1x8x128xf32> -> vector<1x8x128xf32>
    "tpu.trace_stop"() : () -> ()
    %c0_10 = arith.constant 0 : index
    %c0_11 = arith.constant 0 : index
    %c0_12 = arith.constant 0 : index
    %26 = vector.load %arg3[%c0_10, %c0_11, %c0_12] : memref<1x8x128xf32, #tpu.memory_space<vmem>>, vector<1x8x128xf32>
    tpu.vector_store %arg3[%c0_10, %c0_11, %c0_12], %25 {strides = array<i32>} : memref<1x8x128xf32, #tpu.memory_space<vmem>>, vector<1x8x128xf32>,
    return
  }
  func.func @transform_0(%arg0: i32) -> (i32, i32, i32) {
    %c0_i32 = arith.constant 0 : i32
    %c0_i32_0 = arith.constant 0 : i32
    %c0_i32_1 = arith.constant 0 : i32
    return %arg0, %c0_i32, %c0_i32_0 : i32, i32, i32
  }
  func.func @transform_1(%arg0: i32) -> (i32, i32) {
    %c0_i32 = arith.constant 0 : i32
    %c0_i32_0 = arith.constant 0 : i32
    %c0_i32_1 = arith.constant 0 : i32
    return %c0_i32, %c0_i32_0 : i32, i32
  }
  func.func @transform_2(%arg0: i32) -> (i32, i32, i32) {
    %c0_i32 = arith.constant 0 : i32
    %c0_i32_0 = arith.constant 0 : i32
    %c0_i32_1 = arith.constant 0 : i32
    return %arg0, %c0_i32, %c0_i32_0 : i32, i32, i32
  }
}

</mosaic_0001>

<bundles_post_ra>
// kernel: tpu_custom_call.1
= control target key start
LH: loop header
LB: loop body
LE: loop exit
PB: predicated region body
PF: predicated region fallthrough
CT: control target
= control target key end

     0   :  { %7 = vsyncpa [#allocation3], 0  ;;  %s810_s0 = inlined_call_operand.vmem [shape: f32[2,8,4], index: 0, kind: input, shape index: {}]   ;;  %s811_s1 = inlined_call_operand.vmem [shape: f32[4,384], index: 1, kind: input, shape index: {}]   ;;  %s812_s2 = inlined_call_operand.hbm [shape: f32[2,8,128], index: 2, kind: output, shape index: {}]  }
   0x1   :  { %9 = vsyncpa [#allocation3 + $0x1], 0  ;;  %s698_s9 = smov 0   ;;  %s700_s10 = smov 0  }
   0x2   :  { %s702_s11 = smov 0   ;;  %s704_s12 = smov 0  }
   0x3 LB: > { %s719_s13 = sadd.s32 4294967295, %s678_s12   ;;  %s533_s14 = sadd.s32 4294967294, %s678_s12   ;;  %s678_s12 = sphi %s704_s12, %s818_s12   ;;  %s674_s11 = sphi %s702_s11, %s817_s11   ;;  %s670_s10 = sphi %s700_s10, %s816_s10   ;;  %s666_s9 = sphi %s698_s9, %s815_s9  }
   0x4   : > { %s723_s15 = sadd.s32 1, %s678_s12   ;;  %s69_s16 = sadd.s32 1, %s674_s11 }
   0x5   : > { %s66_s17 = ssub.s32 %s678_s12, %s723_s15  ;;  %p79_p0 = scmp.ne.s32.totalorder %s674_s11, %s670_s10 }
   0x6   : > { %p67_p1 = scmp.eq.s32.totalorder %s66_s17, 0  ;;  %p80_p2 = scmp.eq.s32.totalorder %s719_s13, 1 }
   0x7   : > { %p85_p3 = scmp.ne.s32.totalorder %s670_s10, %s666_s9  ;;  %p86_p4 = scmp.eq.s32.totalorder %s533_s14, 1 }
   0x8   : > { %s734_s18 = scalar_select %p67_p1, %s674_s11, %s69_s16  }
   0x9   : > { %p736_p5 = por %p80_p2, %p79_p0  ;;  %p740_p6 = por %p86_p4, %p85_p3 }
   0xa   : > { %p536_p7 = scmp.ge.s32.totalorder %s678_s12, 1  ;;  %p114_p8 = scmp.lt.s32.totalorder %s678_s12, 3 }
   0xc   : > { %p115_p9 = pnand %p536_p7, %p114_p8 }
   0xd   : > { %v140_v0 = vld [vmem:[%s811_s1] sm:$0xff] (!%p115_p9)  ;;  %vm149_vm0 = vcmask (!%p115_p9), 1043456   ;;  %p135_p10 = scmp.lt.s32.totalorder (!%p115_p9), %s719_s13, 1  ;;  %v680_v2 = vmov (!%p115_p9), 0.0   ;;  %vm145_vm1 = vcmask (!%p115_p9), 31744   ;;  %vm681_vm2 = vmmov (!%p115_p9), 0  }
   0xe   : > { %118 = sbr.rel (%p115_p9) target bundleno = 995 (0x3e3), region = 28  ;;  %v144_v1 = vcombine.high (!%p115_p9), %v140_v0, %v140_v0  ;;  %220 = vmatprep.mubr.f32.mxu0 (!%p115_p9), %v680_v2  ;;  %555 = vmatprep.subr.mxu1 (!%p115_p9), %v680_v2  ;;  %v141_v7 = vld [vmem:[%s811_s1 + $0x8] sm:$0xf] (!%p115_p9)  ;;  %v368_v8 = vlaneseq (!%p115_p9)  ;;  %vm374_vm4 = vcmask (!%p115_p9), 64512   ;;  %s132_s30 = sand.u32 (!%p115_p9), 1, %s670_s10  }
   0xf   : > { %557 = vmatprep.mubr.msk.f32.mxu1 (!%p115_p9), %vm681_vm2, %v680_v2  ;;  %556 = vmatpush3.msk.msra.mxu1 (!%p115_p9), %vm149_vm0, %v141_v7  ;;  %s537_s3 = sshll.u32 (!%p115_p9), %s132_s30, 3  ;;  %s546_s6 = sshll.u32 (!%p115_p9), %s719_s13, 7 }
  0x10   : > { %539 = vmatprep.subr.msk.mxu0 (!%p115_p9), %vm149_vm0, %v144_v1  ;;  %565 = vmatprep.subr.mxu1 (!%p115_p9), %v680_v2  ;;  %v369_v9 = vshrl.u32 (!%p115_p9), %v368_v8, 7  ;;  %v371_v10 = vand.u32 (!%p115_p9), 127, %v368_v8  ;;  %s134_s4 = scalar_lea.vmem (!%p115_p9), [#allocation2], %s537_s3  ;;  %s770_s14 = scalar_lea.hbm (!%p115_p9), %s812_s2, %s546_s6 }
  0x11   : > { %540 = vmatpush1.msk.msra.mxu0 (!%p115_p9), %vm149_vm0, %v140_v0  ;;  %s474_s5 = sshll.u32 (!%p115_p9), %s134_s4, 4  ;;  %s461_s16 = scalar_lea.sflag (!%p115_p9), [#allocation3], %s132_s30  ;;  %s765_s5 = int_to_ptr.vmem [resolvable:$true] %s474_s5 }
  0x12   : > { %560 = vmatprep.subr.mxu0 (!%p115_p9), %v680_v2  ;;  %vm372_vm3 = vcmp.gt.s32.totalorder (!%p115_p9), %v371_v10, %v369_v9  ;;  %s616_s17 = scalar_lea.vmem (!%p115_p9), %s765_s5, 128 }
  0x13   : > { %p617_p11 = scmp.ne.s32.totalorder (!%p115_p9), %s765_s5, %s616_s17 }
  0x15   : > { %s136_s23 = scalar_select %p135_p10, %s719_s13, 1 }
  0x16   : > { %p618_p12 = pnand %p617_p11, %p736_p5  ;;  %s682_s13 = smov [#allocation2]  }
  0x17   : > { %s538_s24 = sshll.u32 %s136_s23, 3  ;;  %s620_s21 = sshll.u32 %s682_s13, 4  ;;  %s621_s21 = int_to_ptr.vmem [resolvable:$false] %s620_s21 }
  0x18   : > { %s138_s27 = scalar_lea.vmem %s810_s0, %s538_s24  ;;  %p619_p13 = pneg %p618_p12 }
  0x19   : > { %v139_v3 = vld [vmem:[%s138_s27] sm:$0xff]  ;;  %s622_s22 = scalar_lea.vmem %s621_s21, 256  ;;  %p623_p0 = scmp.lt.s32.totalorder %s765_s5, %s621_s21 }
  0x1a   : > { %541 = vmatmul.mubr.msk.f32.vlgmr.msra.gmra.mrb[0].mxu0 %vm145_vm1, %v139_v3  ;;  %558 = vmatmul.mubr.msk.f32.vlgmr.msra.gmra.mrb[0].mxu1 %vm145_vm1, %v139_v3  ;;  %p624_p1 = scmp.lt.s32.totalorder %s622_s22, %s616_s17 }
  0x1b   : > { %562 = vmatprep.mubr.msk.f32.mxu0 %vm681_vm2, %v680_v2  ;;  %567 = vmatprep.mubr.msk.f32.mxu1 %vm681_vm2, %v680_v2 }
  0x1c   : > { %p625_p2 = por %p624_p1, %p623_p0 }
  0x1e   : > { %p626_p3 = pnand %p625_p2, %p619_p13 }
  0xed   : > { %v222_v4 = vpop.f32.mrb[0].mxu0  ;;  %v293_v20 = vpop.f32.mrb[0].mxu1 }
  0xee   : > { %v224_v5 = vpop.f32.mrb[1].mxu0  ;;  %v297_v6 = vmul.f32 0.35355338, %v222_v4  ;;  %v559_v21 = vpop.f32.mrb[1].mxu1  ;;  %566 = vmatpush3.msra.mxu1 %v293_v20 }
  0xef   : > { %561 = vmatpush3.xpose.msra.mxu0 %v224_v5 }
  0xf2   : > { %563 = vmatmul.mubr.f32.vlgmr.msra.gmra.mrb[2].mxu0 %v297_v6 }
 0x1c5   : > { %v364_v11 = vpop.f32.mrb[2].mxu0 }
 0x1c6   : > { %v373_v12 = vsel %vm372_vm3, -inf, %v364_v11  ;;  %v564_v13 = vpop.f32.mrb[3].mxu0 }
 0x1c7   : > { %v375_v14 = vsel %vm374_vm4, %v373_v12, -inf }
 0x1c8   : > { %376 = vmax.xlane.f32.xlu0 %v375_v14 }
 0x255   : > { %v377_v15 = vpop.xlane.xlu0 %376 }
 0x256   : > { %v378_v16 = vsub.f32 %v373_v12, %v377_v15 }
 0x258   : > { %v379_v17 = vmul.f32 1.442695, %v378_v16 }
 0x25a   : > { %612 = vpow2.f32 %v379_v17 }
 0x264   : > { %v613_v18 = vpop.eup %612 }
 0x265   : > { %v381_v19 = vsel %vm374_vm4, %v613_v18, 0.0 }
 0x266   : > { %382 = vadd.xlane.f32.xlu0 %v381_v19 }
 0x2f3   : > { %v383_v22 = vpop.xlane.xlu0 %382 }
 0x2f4   : > { %614 = vrcp.f32 %v383_v22 }
 0x2fe   : > { %v615_v23 = vpop.eup %614 }
 0x2ff   : > { %v385_v24 = vmul.f32 %v615_v23, %v613_v18 }
 0x301   : > { %568 = vmatmul.mubr.msk.f32.vlgmr.msra.gmra.mrb[2].mxu1 %vm374_vm4, %v385_v24 }
 0x3d4   : > { %v455_v25 = vpop.f32.mrb[2].mxu1 }
 0x3d5   : > { %459 = vst [vmem:[%s134_s4] sm:$0xff] %v455_v25  ;;  %v569_v26 = vpop.f32.mrb[3].mxu1 }
 0x3d6   : > { %629 = shalt.err (!%p626_p3)
}
 0x3d7   : > { %s630_s23 = scalar_lea.hbm %s770_s14, 128  ;;  %s634_s26 = scalar_lea.hbm %s812_s2, 256 }
 0x3d8   : > { %p631_p4 = scmp.ne.s32.totalorder %s770_s14, %s630_s23  ;;  %p635_p9 = scmp.lt.u32.totalorder %s770_s14, %s812_s2 }
 0x3d9   : > { %p636_p10 = scmp.lt.u32.totalorder %s634_s26, %s630_s23  ;;  %p638_p12 = scmp.lt.u32.totalorder %s630_s23, %s770_s14 }
 0x3da   : > { %p632_p7 = pnand %p631_p4, %p736_p5 }
 0x3db   : > { %p637_p11 = por %p636_p10, %p635_p9 }
 0x3dc   : > { %p633_p8 = pneg %p632_p7 }
 0x3dd   : > { %p639_p13 = por %p638_p12, %p637_p11 }
 0x3df   : > { %p640_p0 = pnand %p639_p13, %p633_p8 }
 0x3e1   : > { %643 = shalt.err (!%p640_p0)
}
 0x3e2   : > { %570 = dma.vmem_to_hbm [thread:$0]  (%p736_p5), %s765_s5, 128, %s770_s14, %s461_s16  }
 0x3e3 PF: > { %p576_p1 = scmp.ge.s32.totalorder %s678_s12, 2  ;;  %s486_s29 = sand.u32 1, %s666_s9  }
 0x3e4   : > { %s487_s30 = scalar_lea.sflag [#allocation3], %s486_s29 }
 0x3e5   : > { %p573_p2 = pnand %p576_p1, %p740_p6 }
 0x3e7   : > { %661 = dma.done.wait (!%p573_p2), %s487_s30, 128  }
 0x3e8   : > { %663 = vsyncadd (!%p573_p2), %s487_s30, 4294967168  ;;  %p12_p3 = scmp.ge.s32.totalorder %s723_s15, 4   ;;  %s815_s9 = smov %s670_s10 }
 0x3e9   : > { %s816_s10 = smov %s674_s11  ;;  %s817_s11 = smov %s734_s18 }
 0x3ea   : > { %s818_s12 = smov %s723_s15  ;;  %14 = sbr.rel (!%p12_p3) target bundleno = 3 (0x3), region = 63 }
 0x3f1   :  { %492 = vsyncpa [#allocation3], 1 }
 0x3f2   :  { %494 = vsyncpa [#allocation3 + $0x1], 1 }

</bundles_post_ra>
